<compile_context>
chip_gen: v6e
topology: v6e:2x2x1
jax: 0.10.0
libtpu: 0.0.40
codegen_flags: <defaults>
</compile_context>

<pallas_src>
import jax
import jax.numpy as jnp
from jax.experimental import pallas as pl
from jax.experimental.pallas import tpu as pltpu


def _round_up(n, m):
    return ((n + m - 1) // m) * m


def _mlp_kernel(x_ref, w1_ref, b1_ref, w2_ref, b2_ref, w3_ref, b3_ref, o_ref):
    # In-kernel cast to bf16 (VALU has slack); f32 accumulation on the MXU.
    x = x_ref[...].astype(jnp.bfloat16)                                   # (TB, F)

    # fc1 + ReLU
    h1 = jnp.dot(x, w1_ref[...], preferred_element_type=jnp.float32) + b1_ref[...]
    h1 = jnp.maximum(h1, 0.0)                                             # (TB, 128) f32

    # fc2 + ReLU (hidden 64 zero-padded to 128; padded lanes stay exactly 0)
    h2 = jnp.dot(h1.astype(jnp.bfloat16), w2_ref[...],
                 preferred_element_type=jnp.float32) + b2_ref[...]
    h2 = jnp.maximum(h2, 0.0)                                             # (TB, 128) f32

    # fc3 (single output unit): exact f32 multiply + cross-lane reduce (XLU),
    # sigmoid only on the real (TB, 1) column.
    h3 = jnp.sum(h2 * w3_ref[...], axis=-1, keepdims=True) + b3_ref[...]  # (TB, 1) f32
    o_ref[...] = (1.0 / (1.0 + jnp.exp(-h3))).astype(o_ref.dtype)


def _choose_batch_tile(B, F):
    """Pick (TB, G, B_pad): big tiles to amortize per-step overhead, bounded by a
    conservative v7x VMEM budget, grid split in two when a single tile is large."""
    budget = 24 * 1024 * 1024                       # moving blocks + resident weights
    f_lanes = _round_up(max(F, 1), 128)             # x block pads lanes in VMEM
    w_bytes = 2 * ((F * 128 + 128 * 128) * 2 + (2 * 128 + 128 + 1) * 4)
    per_row = 2 * (f_lanes * 4 + 128 * 4)           # 2x buffers of (x block + out block)
    tb_cap = max(64, ((budget - w_bytes) // per_row) // 8 * 8)
    TB = min(2048, tb_cap, _round_up(B, 8))
    G = pl.cdiv(B, TB)
    # v7x has 2 TensorCores sharing the "parallel" axis: don't leave one idle.
    if G == 1 and TB >= 512:
        TB = _round_up(pl.cdiv(TB, 2), 8)
        G = pl.cdiv(B, TB)
    return TB, G, G * TB


def _vmem_limit_bytes(TB, F):
    f_lanes = _round_up(max(F, 1), 128)
    moving = 2 * (TB * f_lanes * 4 + TB * 128 * 4)          # double-buffered x + out
    weights = 2 * ((F * 128 + 128 * 128) * 2 + (2 * 128 + 128 + 1) * 4)
    need = moving + weights + (2 << 20)                      # headroom
    return int(min(max(need, 8 << 20), 64 << 20))


def text_classifier_forward(x, params, *, tb=None):
    """x: [B, F] float32. params: w1[F,128], b1[1,128], w2[128,64], b2[1,64],
    w3[64,1], b3[1,1] (already [in, out], i.e. transposed vs. nn.Linear weights)."""
    B, F = x.shape
    H2 = params["w2"].shape[1]            # 64
    H2P = _round_up(H2, 128)              # 128

    if tb is None:
        TB, G, B_pad = _choose_batch_tile(B, F)
    else:
        TB = max(8, _round_up(min(tb, _round_up(B, 8)), 8))
        G = pl.cdiv(B, TB)
        B_pad = G * TB

    x_p = x if B_pad == B else jnp.pad(x, ((0, B_pad - B), (0, 0)))
    x_p = x_p.astype(jnp.float32)         # kernel does the bf16 cast in-VMEM

    # fc1/fc2 operands in bf16 (MXU); biases and fc3 weights in f32.
    w1 = params["w1"].astype(jnp.bfloat16)                                      # (F, 128)
    b1 = params["b1"].astype(jnp.float32)                                       # (1, 128)
    w2 = jnp.pad(params["w2"], ((0, 0), (0, H2P - H2))).astype(jnp.bfloat16)    # (128, 128)
    b2 = jnp.pad(params["b2"], ((0, 0), (0, H2P - H2))).astype(jnp.float32)     # (1, 128)
    w3 = jnp.pad(params["w3"].T, ((0, 0), (0, H2P - H2))).astype(jnp.float32)   # (1, 128)
    b3 = params["b3"].astype(jnp.float32)                                       # (1, 1)

    # Weights/biases: constant index_map -> VMEM-resident across grid steps.
    resident = lambda a: pl.BlockSpec(a.shape, lambda i, _nd=a.ndim: (0,) * _nd)

    out = pl.pallas_call(
        _mlp_kernel,
        out_shape=jax.ShapeDtypeStruct((B_pad, 1), jnp.float32),
        grid=(G,),
        in_specs=[
            pl.BlockSpec((TB, F), lambda i: (i, 0)),    # x tile moves with the grid
            resident(w1), resident(b1),
            resident(w2), resident(b2),
            resident(w3), resident(b3),
        ],
        out_specs=pl.BlockSpec((TB, 1), lambda i: (i, 0)),
        compiler_params=pltpu.CompilerParams(
            dimension_semantics=("parallel",),
            vmem_limit_bytes=_vmem_limit_bytes(TB, F),
        ),
    )(x_p, w1, b1, w2, b2, w3, b3)

    return out if B_pad == B else out[:B]


def init_params(num_features, key):
    """Deterministic init mimicking nn.Linear's uniform(-1/sqrt(fan_in), 1/sqrt(fan_in))."""
    k1, k2, k3, k4, k5, k6 = jax.random.split(key, 6)

    def linear(kw, kb, fan_in, fan_out):
        bound = 1.0 / jnp.sqrt(fan_in)
        w = jax.random.uniform(kw, (fan_in, fan_out), jnp.float32, -bound, bound)
        b = jax.random.uniform(kb, (1, fan_out), jnp.float32, -bound, bound)
        return w, b

    w1, b1 = linear(k1, k2, num_features, 128)
    w2, b2 = linear(k3, k4, 128, 64)
    w3, b3 = linear(k5, k6, 64, 1)
    return {"w1": w1, "b1": b1, "w2": w2, "b2": b2, "w3": w3, "b3": b3}


def _ref_forward(x, params):
    """Pure-JAX f32 reference of the same MLP (eval-mode dropout = identity)."""
    h = jnp.maximum(x @ params["w1"] + params["b1"], 0.0)
    h = jnp.maximum(h @ params["w2"] + params["b2"], 0.0)
    return jax.nn.sigmoid(h @ params["w3"] + params["b3"])


if __name__ == "__main__":
    key = jax.random.PRNGKey(0)
    kx, kp, kx2 = jax.random.split(key, 3)

    B, F = 8, 32  # small batch, num_features=32
    x = jax.random.normal(kx, (B, F), dtype=jnp.float32)
    params = init_params(F, kp)

    out = text_classifier_forward(x, params)
    jax.block_until_ready(out)
    ref = _ref_forward(x, params)
    assert out.shape == (B, 1)
    # bf16 matmul operands in fc1/fc2 vs f32 reference: allow small precision delta.
    assert jnp.allclose(out, ref, atol=2e-2, rtol=2e-2)

    # Exercise the multi-tile grid + ragged-batch padding path with a forced small tile.
    B2 = 200
    x2 = jax.random.normal(kx2, (B2, F), dtype=jnp.float32)
    out2 = text_classifier_forward(x2, params, tb=64)
    jax.block_until_ready(out2)
    ref2 = _ref_forward(x2, params)
    assert out2.shape == (B2, 1)
    assert jnp.allclose(out2, ref2, atol=2e-2, rtol=2e-2)

    print("KERNEL_OK")
</pallas_src>

<mosaic_0001>
module attributes {stable_mosaic.version = 11 : i64} {
  func.func @_mlp_kernel(%arg0: i32, %arg1: memref<8x32xf32, #tpu.memory_space<vmem>>, %arg2: memref<32x128xbf16, #tpu.memory_space<vmem>>, %arg3: memref<1x128xf32, #tpu.memory_space<vmem>>, %arg4: memref<128x128xbf16, #tpu.memory_space<vmem>>, %arg5: memref<1x128xf32, #tpu.memory_space<vmem>>, %arg6: memref<1x128xf32, #tpu.memory_space<vmem>>, %arg7: memref<1x1xf32, #tpu.memory_space<vmem>>, %arg8: memref<8x1xf32, #tpu.memory_space<vmem>>) attributes {dimension_semantics = [#tpu.dimension_semantics<parallel>], iteration_bounds = array<i64: 1>, scalar_prefetch = 0 : i64, scratch_operands = 0 : i64, tpu.core_type = #tpu.core_type<tc>, window_params = [{transform_indices = @transform_0, window_bounds = array<i64: 8, 32>}, {pipeline_mode = #tpu.pipeline_mode<synchronous>, transform_indices = @transform_1, window_bounds = array<i64: 32, 128>}, {pipeline_mode = #tpu.pipeline_mode<synchronous>, transform_indices = @transform_2, window_bounds = array<i64: 1, 128>}, {pipeline_mode = #tpu.pipeline_mode<synchronous>, transform_indices = @transform_3, window_bounds = array<i64: 128, 128>}, {pipeline_mode = #tpu.pipeline_mode<synchronous>, transform_indices = @transform_4, window_bounds = array<i64: 1, 128>}, {pipeline_mode = #tpu.pipeline_mode<synchronous>, transform_indices = @transform_5, window_bounds = array<i64: 1, 128>}, {pipeline_mode = #tpu.pipeline_mode<synchronous>, transform_indices = @transform_6, window_bounds = array<i64: 1, 1>}, {transform_indices = @transform_7, window_bounds = array<i64: 8, 1>}]} {
    %c0 = arith.constant 0 : index
    %c0_0 = arith.constant 0 : index
    %0 = vector.load %arg1[%c0, %c0_0] : memref<8x32xf32, #tpu.memory_space<vmem>>, vector<8x32xf32>
    %1 = arith.truncf %0 : vector<8x32xf32> to vector<8x32xbf16>
    %c0_1 = arith.constant 0 : index
    %c0_2 = arith.constant 0 : index
    %2 = vector.load %arg2[%c0_1, %c0_2] : memref<32x128xbf16, #tpu.memory_space<vmem>>, vector<32x128xbf16>
    %cst = arith.constant dense<0.000000e+00> : vector<8x128xf32>
    %3 = tpu.matmul %1, %2, %cst {dimension_numbers = #tpu.dot_dimension_numbers<[1], [0], [0], [1], [0, 0, 1, 1], [], []>} : vector<8x32xbf16>, vector<32x128xbf16>, vector<8x128xf32> -> vector<8x128xf32>
    %c0_3 = arith.constant 0 : index
    %c0_4 = arith.constant 0 : index
    %4 = vector.load %arg3[%c0_3, %c0_4] : memref<1x128xf32, #tpu.memory_space<vmem>>, vector<1x128xf32>
    %5 = vector.broadcast %4 : vector<1x128xf32> to vector<8x128xf32>
    %6 = arith.addf %3, %5 : vector<8x128xf32>
    %cst_5 = arith.constant 0.000000e+00 : f32
    %7 = vector.broadcast %cst_5 : f32 to vector<8x128xf32>
    %8 = arith.maximumf %6, %7 : vector<8x128xf32>
    %9 = arith.truncf %8 : vector<8x128xf32> to vector<8x128xbf16>
    %c0_6 = arith.constant 0 : index
    %c0_7 = arith.constant 0 : index
    %10 = vector.load %arg4[%c0_6, %c0_7] : memref<128x128xbf16, #tpu.memory_space<vmem>>, vector<128x128xbf16>
    %cst_8 = arith.constant dense<0.000000e+00> : vector<8x128xf32>
    %11 = tpu.matmul %9, %10, %cst_8 {dimension_numbers = #tpu.dot_dimension_numbers<[1], [0], [0], [1], [0, 0, 1, 1], [], []>} : vector<8x128xbf16>, vector<128x128xbf16>, vector<8x128xf32> -> vector<8x128xf32>
    %c0_9 = arith.constant 0 : index
    %c0_10 = arith.constant 0 : index
    %12 = vector.load %arg5[%c0_9, %c0_10] : memref<1x128xf32, #tpu.memory_space<vmem>>, vector<1x128xf32>
    %13 = vector.broadcast %12 : vector<1x128xf32> to vector<8x128xf32>
    %14 = arith.addf %11, %13 : vector<8x128xf32>
    %cst_11 = arith.constant 0.000000e+00 : f32
    %15 = vector.broadcast %cst_11 : f32 to vector<8x128xf32>
    %16 = arith.maximumf %14, %15 : vector<8x128xf32>
    %c0_12 = arith.constant 0 : index
    %c0_13 = arith.constant 0 : index
    %17 = vector.load %arg6[%c0_12, %c0_13] : memref<1x128xf32, #tpu.memory_space<vmem>>, vector<1x128xf32>
    %18 = vector.broadcast %17 : vector<1x128xf32> to vector<8x128xf32>
    %19 = arith.mulf %16, %18 : vector<8x128xf32>
    %cst_14 = arith.constant dense<0.000000e+00> : vector<8xf32>
    %20 = vector.multi_reduction <add>, %19, %cst_14 [1] : vector<8x128xf32> to vector<8xf32>
    %21 = vector.shape_cast %20 : vector<8xf32> to vector<8x1xf32>
    %c0_15 = arith.constant 0 : index
    %c0_16 = arith.constant 0 : index
    %22 = vector.load %arg7[%c0_15, %c0_16] : memref<1x1xf32, #tpu.memory_space<vmem>>, vector<1x1xf32>
    %23 = vector.broadcast %22 : vector<1x1xf32> to vector<8x1xf32>
    %24 = arith.addf %21, %23 : vector<8x1xf32>
    %cst_17 = arith.constant 0.000000e+00 : f32
    %25 = vector.broadcast %cst_17 : f32 to vector<8x1xf32>
    %26 = arith.subf %25, %24 : vector<8x1xf32>
    %27 = math.exp %26 : vector<8x1xf32>
    %cst_18 = arith.constant 1.000000e+00 : f32
    %28 = vector.broadcast %cst_18 : f32 to vector<8x1xf32>
    %29 = arith.addf %28, %27 : vector<8x1xf32>
    %cst_19 = arith.constant 1.000000e+00 : f32
    %30 = vector.broadcast %cst_19 : f32 to vector<8x1xf32>
    %31 = arith.divf %30, %29 : vector<8x1xf32>
    %c0_20 = arith.constant 0 : index
    %c0_21 = arith.constant 0 : index
    %32 = vector.load %arg8[%c0_20, %c0_21] : memref<8x1xf32, #tpu.memory_space<vmem>>, vector<8x1xf32>
    tpu.vector_store %arg8[%c0_20, %c0_21], %31 {strides = array<i32>} : memref<8x1xf32, #tpu.memory_space<vmem>>, vector<8x1xf32>,
    return
  }
  func.func @transform_0(%arg0: i32) -> (i32, i32) {
    %c0_i32 = arith.constant 0 : i32
    %c0_i32_0 = arith.constant 0 : i32
    return %arg0, %c0_i32 : i32, i32
  }
  func.func @transform_1(%arg0: i32) -> (i32, i32) {
    %c0_i32 = arith.constant 0 : i32
    %c0_i32_0 = arith.constant 0 : i32
    %c0_i32_1 = arith.constant 0 : i32
    return %c0_i32, %c0_i32_0 : i32, i32
  }
  func.func @transform_2(%arg0: i32) -> (i32, i32) {
    %c0_i32 = arith.constant 0 : i32
    %c0_i32_0 = arith.constant 0 : i32
    %c0_i32_1 = arith.constant 0 : i32
    return %c0_i32, %c0_i32_0 : i32, i32
  }
  func.func @transform_3(%arg0: i32) -> (i32, i32) {
    %c0_i32 = arith.constant 0 : i32
    %c0_i32_0 = arith.constant 0 : i32
    %c0_i32_1 = arith.constant 0 : i32
    return %c0_i32, %c0_i32_0 : i32, i32
  }
  func.func @transform_4(%arg0: i32) -> (i32, i32) {
    %c0_i32 = arith.constant 0 : i32
    %c0_i32_0 = arith.constant 0 : i32
    %c0_i32_1 = arith.constant 0 : i32
    return %c0_i32, %c0_i32_0 : i32, i32
  }
  func.func @transform_5(%arg0: i32) -> (i32, i32) {
    %c0_i32 = arith.constant 0 : i32
    %c0_i32_0 = arith.constant 0 : i32
    %c0_i32_1 = arith.constant 0 : i32
    return %c0_i32, %c0_i32_0 : i32, i32
  }
  func.func @transform_6(%arg0: i32) -> (i32, i32) {
    %c0_i32 = arith.constant 0 : i32
    %c0_i32_0 = arith.constant 0 : i32
    %c0_i32_1 = arith.constant 0 : i32
    return %c0_i32, %c0_i32_0 : i32, i32
  }
  func.func @transform_7(%arg0: i32) -> (i32, i32) {
    %c0_i32 = arith.constant 0 : i32
    %c0_i32_0 = arith.constant 0 : i32
    return %arg0, %c0_i32 : i32, i32
  }
}

</mosaic_0001>

<bundles_post_ra>
// kernel: tpu_custom_call.1
= control target key start
LH: loop header
LB: loop body
LE: loop exit
PB: predicated region body
PF: predicated region fallthrough
CT: control target
= control target key end

     0   :  { %s494_s0 = inlined_call_operand.hbm [shape: f32[8,32], index: 0, kind: input, shape index: {}]   ;;  %s495_s1 = inlined_call_operand.hbm [shape: bf16[32,128], index: 1, kind: input, shape index: {}]   ;;  %s496_s2 = inlined_call_operand.vmem [shape: f32[1,128], index: 2, kind: input, shape index: {}]   ;;  %s497_s3 = inlined_call_operand.hbm [shape: bf16[128,128], index: 3, kind: input, shape index: {}]   ;;  %s498_s4 = inlined_call_operand.vmem [shape: f32[1,128], index: 4, kind: input, shape index: {}]   ;;  %s499_s5 = inlined_call_operand.vmem [shape: f32[1,128], index: 5, kind: input, shape index: {}]   ;;  %s500_s6 = inlined_call_operand.<no memory space> [shape: f32[1,1], index: 6, kind: input, shape index: {}]   ;;  %s501_s7 = inlined_call_operand.vmem [shape: f32[8,1], index: 7, kind: output, shape index: {}]  }
   0x1   :  { %v12_v0 = vstv %s500_s6 }
   0x2   :  { %13 = vst [vmem:[#allocation2] sm:$0x1] %v12_v0 }
   0x3   :  { %14 = vsyncpa [#allocation4], 0 }
   0x4   :  { %15 = vsyncpa [#allocation6], 0  ;;  %s423_s26 = smov [#allocation5]  }
   0x5   :  { %s31_s27 = sshll.u32 %s423_s26, 4  ;;  %s32_s27 = int_to_ptr.vmem [resolvable:$true] %s31_s27 }
   0x6   :  { %s367_s28 = scalar_lea.vmem %s32_s27, 256  ;;  %p372_p1 = scmp.lt.s32.totalorder %s32_s27, %s32_s27 }
   0x7   :  { %p368_p0 = scmp.ne.s32.totalorder %s32_s27, %s367_s28  ;;  %p373_p2 = scmp.lt.s32.totalorder %s367_s28, %s367_s28 }
   0x9   :  { %p374_p3 = por %p373_p2, %p372_p1 }
   0xb   :  { %p375_p4 = pnand %p374_p3, %p368_p0 }
   0xd   :  { %378 = shalt.err (!%p375_p4)
}
   0xe   :  { %s424_s29 = smov 64   ;;  %s425_s30 = smov 4  }
   0xf   :  { %37 = dma.hbm_to_vmem [thread:$0]  %s495_s1, 256, %s32_s27, [#allocation6], %s424_s29, %s424_s29, %s425_s30  }
  0x10   :  { %s426_s6 = smov [#allocation3]   ;;  %s427_s11 = smov [#allocation7]  }
  0x11   :  { %s22_s10 = sshll.u32 %s426_s6, 4  ;;  %s45_s12 = sshll.u32 %s427_s11, 4  ;;  %s23_s10 = int_to_ptr.vmem [resolvable:$true] %s22_s10  ;;  %s46_s12 = int_to_ptr.vmem [resolvable:$true] %s45_s12 }
  0x12   :  { %s387_s13 = scalar_lea.vmem %s23_s10, 128  ;;  %p392_p6 = scmp.lt.s32.totalorder %s23_s10, %s23_s10 }
  0x13   :  { %p388_p5 = scmp.ne.s32.totalorder %s23_s10, %s387_s13  ;;  %p393_p7 = scmp.lt.s32.totalorder %s387_s13, %s387_s13 }
  0x15   :  { %p394_p8 = por %p393_p7, %p392_p6 }
  0x17   :  { %p395_p9 = pnand %p394_p8, %p388_p5 }
  0x19   :  { %398 = shalt.err (!%p395_p9)
}
  0x1a   :  { %25 = dma.hbm_to_vmem [thread:$0]  %s494_s0, 128, %s23_s10, [#allocation4]  }
  0x1b   :  { %s407_s16 = scalar_lea.vmem %s46_s12, 1024  ;;  %p412_p11 = scmp.lt.s32.totalorder %s46_s12, %s46_s12 }
  0x1c   :  { %p408_p10 = scmp.ne.s32.totalorder %s46_s12, %s407_s16  ;;  %p413_p12 = scmp.lt.s32.totalorder %s407_s16, %s407_s16 }
  0x1e   :  { %p414_p13 = por %p413_p12, %p412_p11 }
  0x20   :  { %p415_p0 = pnand %p414_p13, %p408_p10 }
  0x22   :  { %418 = shalt.err (!%p415_p0)
}
  0x23   :  { %51 = dma.hbm_to_vmem [thread:$0]  %s497_s3, 1024, %s46_s12, [#allocation6], %s424_s29, %s424_s29, %s425_s30  }
  0x24   :  { %419 = dma.done.wait [#allocation4], 128  }
  0x25   :  { %420 = vsyncadd [#allocation4], 4294967168 }
  0x26   :  { %421 = dma.done.wait [#allocation6], 1280  }
  0x27   :  { %422 = vsyncadd [#allocation6], 4294966016  ;;  %v428_v1 = vmov 0.0   ;;  %vm429_vm0 = vmmov 0   ;;  %v345_v2 = vld [vmem:[#allocation5 + $0x8] sm:$0xff]   ;;  %v346_v3 = vld [vmem:[#allocation5] sm:$0xff]  }
  0x28   :  { %310 = vmatprep.subr.bf16.mxu0 %v428_v1  ;;  %314 = vmatprep.mubr.msk.bf16.mxu0 %vm429_vm0, %v428_v1  ;;  %v68_v4 = vld [vmem:[#allocation3] sm:$0xff]  ;;  %v347_v5 = vld [vmem:[#allocation7 + $0x38] sm:$0xff]   ;;  %v348_v7 = vld [vmem:[#allocation7 + $0x30] sm:$0xff]   ;;  %vm93_vm1 = vcmask 261120   ;;  %vm275_vm2 = vcmask 7168  }
  0x29   :  { %318 = vmatprep.subr.bf16.mxu1 %v428_v1  ;;  %334 = vmatprep.mubr.msk.bf16.mxu1 %vm429_vm0, %v428_v1  ;;  %v69_v6 = vpack.c.bf16 %v68_v4, %v68_v4  ;;  %v349_v8 = vld [vmem:[#allocation7 + $0x28] sm:$0xff]   ;;  %v350_v9 = vld [vmem:[#allocation7 + $0x20] sm:$0xff]   ;;  %v351_v10 = vld [vmem:[#allocation7 + $0x18] sm:$0xff]  }
  0x2a   :  { %311 = vmatpush3.bf16.msra.mxu0 %v345_v2  ;;  %319 = vmatpush3.bf16.msra.mxu1 %v347_v5  ;;  %v352_v11 = vld [vmem:[#allocation7 + $0x10] sm:$0xff]   ;;  %v353_v12 = vld [vmem:[#allocation7 + $0x8] sm:$0xff]   ;;  %v354_v13 = vld [vmem:[#allocation7] sm:$0xff]  }
  0x2b   :  { %312 = vmatprep.subr.bf16.mxu0 %v428_v1  ;;  %320 = vmatprep.subr.bf16.mxu1 %v428_v1  ;;  %v283_v14 = vld [vmem:[%s496_s2] ss:$0 sm:$0xff] }
  0x2c   :  { %v287_v22 = vld [vmem:[%s498_s4] ss:$0 sm:$0xff] }
  0x2d   :  { %v296_v26 = vld [vmem:[%s499_s5] ss:$0 sm:$0xff] }
  0x2e   :  { %313 = vmatpush3.bf16.msra.mxu0 %v346_v3  ;;  %321 = vmatpush3.bf16.msra.mxu1 %v348_v7  ;;  %v297_v31 = vld [vmem:[#allocation2] ss:$0 sm:$0xff] }
  0x2f   :  { %322 = vmatprep.subr.bf16.mxu1 %v428_v1 }
  0x31   :  { %315 = vmatmul.mubr.msk.bf16.vlgmr.msra.gmra.mxu0 %vm93_vm1, %v69_v6 }
  0x32   :  { %323 = vmatpush3.bf16.msra.mxu1 %v349_v8 }
  0x33   :  { %324 = vmatprep.subr.bf16.mxu1 %v428_v1 }
  0x36   :  { %325 = vmatpush3.bf16.msra.mxu1 %v350_v9 }
  0x37   :  { %326 = vmatprep.subr.bf16.mxu1 %v428_v1 }
  0x3a   :  { %327 = vmatpush3.bf16.msra.mxu1 %v351_v10 }
  0x3b   :  { %328 = vmatprep.subr.bf16.mxu1 %v428_v1 }
  0x3e   :  { %329 = vmatpush3.bf16.msra.mxu1 %v352_v11 }
  0x3f   :  { %330 = vmatprep.subr.bf16.mxu1 %v428_v1 }
  0x42   :  { %331 = vmatpush3.bf16.msra.mxu1 %v353_v12 }
  0x43   :  { %332 = vmatprep.subr.bf16.mxu1 %v428_v1 }
  0x46   :  { %333 = vmatpush3.bf16.msra.mxu1 %v354_v13 }
  0xf1   :  { %v131_v15 = vpop.f32.mrf.mxu0 }
  0xf2   :  { %v132_v16 = vadd.f32 %v283_v14, %v131_v15 }
  0xf3   :  { %v316_v17 = vpop.f32.mrf.mxu0 }
  0xf4   :  { %v137_v18 = vmax.f32 %v132_v16, 0.0 }
  0xf5   :  { %v134_v19 = vpop.f32.mrf.mxu0 }
  0xf6   :  { %v138_v20 = vpack.c.bf16 %v137_v18, %v137_v18 }
  0xf7   :  { %v317_v21 = vpop.f32.mrf.mxu0 }
  0xf8   :  { %335 = vmatmul.mubr.bf16.vlgmr.msra.gmra.mxu1 %v138_v20 }
 0x1b8   :  { %v244_v23 = vpop.f32.mrf.mxu1 }
 0x1b9   :  { %v245_v24 = vadd.f32 %v287_v22, %v244_v23 }
 0x1ba   :  { %v336_v25 = vpop.f32.mrf.mxu1 }
 0x1bb   :  { %v250_v27 = vmax.f32 %v245_v24, 0.0 }
 0x1bc   :  { %v247_v28 = vpop.f32.mrf.mxu1 }
 0x1bd   :  { %v258_v29 = vmul.f32 %v296_v26, %v250_v27 }
 0x1be   :  { %v337_v30 = vpop.f32.mrf.mxu1 }
 0x1bf   :  { %259 = vadd.xlane.f32.xlu0 %v258_v29 }
 0x248   :  { %v260_v32 = vpop.xlane.xlu0 %259 }
 0x249   :  { %v268_v33 = vadd.f32 %v297_v31, %v260_v32 }
 0x24b   :  { %v269_v34 = vsub.f32 0.0, %v268_v33 }
 0x24d   :  { %v270_v35 = vmul.f32 1.442695, %v269_v34 }
 0x24f   :  { %355 = vpow2.f32 %v270_v35 }
 0x25c   :  { %v356_v36 = vpop.eup %355 }
 0x25d   :  { %v272_v37 = vadd.f32 1.0, %v356_v36 }
 0x25f   :  { %357 = vrcp.f32 %v272_v37 }
 0x26c   :  { %v358_v38 = vpop.eup %357 }
 0x26d   :  { %276 = vst.msk [vmem:[%s501_s7] sm:$0xff] %vm275_vm2, %v358_v38 }
 0x26e   :  { %281 = vsyncpa [#allocation4], 1 }
 0x26f   :  { %282 = vsyncpa [#allocation6], 1 }

</bundles_post_ra>
